<compile_context>
chip_gen: v7x
topology: tpu7x:2x2x1
jax: 0.10.0
libtpu: 0.0.40
codegen_flags: <defaults>
</compile_context>

<pallas_src>
import math

import jax
import jax.numpy as jnp
import numpy as np
from jax.experimental import pallas as pl
from jax.experimental.pallas import tpu as pltpu


# ----------------------------- Pallas kernel ------------------------------

def _neural_search_kernel(x_ref, w1x_ref, w1n_ref, w2_ref, brow_ref, bcol_ref,
                          mask_ref, o_ref):
    """One grid step = Bt batch elements, all N*N swap pairs at once.

    x_ref    : [Bt, N, D]     f32   tour features
    w1x_ref  : [D, 4D]        bf16  [A | C]  (W1^T chunks applied to x_i / x_j)
    w1n_ref  : [D, 4D]        bf16  [B | D]  (W1^T chunks applied to x_{i+1}/x_{j+1})
    w2_ref   : [D, 2D]        bf16  layer-2 weight (original torch orientation)
    brow_ref : [2, 4D]        f32   row0 = [b1 | 0...0], row1[0, 0] = b3
    bcol_ref : [D, 2]         f32   col0 = b2, col1 = w3
    mask_ref : [1, Bt*N*N]    f32   static 2-opt validity mask (0/1)
    o_ref    : [1, Bt*N*N]    f32   lane-flat improvement scores
    """
    Bt, N, D = x_ref.shape
    TWO_D = 2 * D
    R = Bt * N * N

    x = x_ref[...]                                              # [Bt, N, D]
    # x_next[:, k] = x[:, (k+1) % N]  (the torch (i+1)%N pairing); a sublane
    # rotate per batch element, done in-kernel so only [B,N,D] hits HBM.
    x_next = jnp.concatenate([x[:, 1:, :], x[:, :1, :]], axis=1)

    xf = x.reshape(Bt * N, D).astype(jnp.bfloat16)
    xn = x_next.reshape(Bt * N, D).astype(jnp.bfloat16)

    # Layer 1 factored through the pair structure (no per-pair gathers):
    #   uv[:, :2D] = U = x@A + x_next@B + b1   (contribution of position i)
    #   uv[:, 2D:] = V = x@C + x_next@D        (contribution of position j)
    uv = (jnp.dot(xf, w1x_ref[...], preferred_element_type=jnp.float32)
          + jnp.dot(xn, w1n_ref[...], preferred_element_type=jnp.float32)
          + brow_ref[0:1, :])                                   # [Bt*N, 4D] f32

    u = uv[:, :TWO_D].reshape(Bt, N, TWO_D)
    v = uv[:, TWO_D:].reshape(Bt, N, TWO_D)
    h1 = jnp.maximum(u[:, :, None, :] + v[:, None, :, :], 0.0)  # [Bt, N, N, 2D]
    h1 = h1.reshape(R, TWO_D)                                   # [R, 2D]

    # Layers 2 & 3 in transposed (pairs-on-lanes) form: one small f32
    # transpose, then bias add / ReLU / reduce / tanh / mask / store all run
    # lane-dense over the whole Bt*N*N pair axis.
    h1t = jnp.transpose(h1).astype(jnp.bfloat16)                # [2D, R]
    b2 = bcol_ref[:, 0:1]                                       # [D, 1]
    w3 = bcol_ref[:, 1:2]                                       # [D, 1]
    h2t = jnp.maximum(
        jnp.dot(w2_ref[...], h1t, preferred_element_type=jnp.float32) + b2,
        0.0)                                                    # [D, R] f32

    b3 = brow_ref[1:2, 0:1]                                     # [1, 1]
    s = jnp.tanh(jnp.sum(h2t * w3, axis=0, keepdims=True) + b3)  # [1, R]
    o_ref[...] = s * mask_ref[...]                              # lane-dense store


# ----------------------------- tiling helper --------------------------------

def _pick_bt(batch, pairs_per_batch):
    """Batch elements fused per grid step.

    Target >= 256 pair-rows per step (fills MXU rows, amortizes the ~0.35us
    per-step overhead), but keep >= 2 grid steps whenever batch >= 2 so both
    v7x TensorCores get work, and cap rows/step so the quadratic
    intermediates stay far below the v7x 64 MiB VMEM budget.
    """
    target = -(-256 // pairs_per_batch)              # ceil(256 / NN)
    cap_rows = max(1, 2048 // pairs_per_batch)
    bt = max(1, min(target, cap_rows, batch))
    if batch >= 2:
        bt = max(1, min(bt, batch // 2))
    while batch % bt:
        bt -= 1
    return bt


# ----------------------------- forward wrapper ----------------------------

def neural_search_forward(params, tour_features, coords=None):
    """Returns (improved_tour [B,N] int32, improvement_matrix [B,N,N] f32)."""
    del coords  # unused by the reference forward; kept for signature parity
    B, N, D = tour_features.shape
    NN = N * N
    Bt = _pick_bt(B, NN)
    G = B // Bt
    R = Bt * NN

    # Static 2-opt validity mask (j >= i+2 and (j - i) != N-1), built once on
    # the host (no in-kernel integer div/mod), tiled over the Bt fused batches.
    ii = np.arange(N).reshape(N, 1)
    jj = np.arange(N).reshape(1, N)
    valid = (jj >= ii + 2) & ((jj - ii) != (N - 1))
    mask = jnp.asarray(
        np.tile(valid.astype(np.float32).reshape(-1), Bt).reshape(1, R))

    tf = tour_features.astype(jnp.float32)

    flat = pl.pallas_call(
        _neural_search_kernel,
        grid=(G,),
        in_specs=[
            pl.BlockSpec((Bt, N, D), lambda g: (g, 0, 0)),
            pl.BlockSpec((D, 4 * D), lambda g: (0, 0)),
            pl.BlockSpec((D, 4 * D), lambda g: (0, 0)),
            pl.BlockSpec((D, 2 * D), lambda g: (0, 0)),
            pl.BlockSpec((2, 4 * D), lambda g: (0, 0)),
            pl.BlockSpec((D, 2), lambda g: (0, 0)),
            pl.BlockSpec((1, R), lambda g: (0, 0)),
        ],
        out_specs=pl.BlockSpec((None, 1, R), lambda g: (g, 0, 0)),
        out_shape=jax.ShapeDtypeStruct((G, 1, R), jnp.float32),
        compiler_params=pltpu.CompilerParams(
            dimension_semantics=("parallel",)),
    )(tf, params["w1x"], params["w1n"], params["w2"], params["brow"],
      params["bcol"], mask)

    improvement_matrix = flat.reshape(B, N, N)
    # The PyTorch forward returns the identity tour (best_i/best_j are dead code).
    improved_tour = jnp.broadcast_to(
        jnp.arange(N, dtype=jnp.int32)[None, :], (B, N))
    return improved_tour, improvement_matrix


# ----------------------------- parameters ---------------------------------

def init_params(key, hidden_dim):
    """swap_evaluator weights (nn.Linear default-style init), packed for the kernel."""
    D = hidden_dim
    keys = jax.random.split(key, 3)

    def linear(k, out_f, in_f):
        bound = 1.0 / math.sqrt(in_f)
        w = jax.random.uniform(k, (out_f, in_f), jnp.float32, -bound, bound)
        b = jax.random.uniform(jax.random.fold_in(k, 1), (out_f,),
                               jnp.float32, -bound, bound)
        return w, b

    w1, b1 = linear(keys[0], 2 * D, 4 * D)   # Linear(4D, 2D)
    w2, b2 = linear(keys[1], D, 2 * D)       # Linear(2D, D)
    w3, b3 = linear(keys[2], 1, D)           # Linear(D, 1)

    # Split W1^T into the four D-row chunks hit by x_i, x_{i+1}, x_j, x_{j+1}
    # and pack them as [A|C] (applied to x) and [B|D] (applied to x_next).
    w1t = jnp.transpose(w1)                                   # [4D, 2D]
    a, bb, c, dd = (w1t[0:D], w1t[D:2 * D], w1t[2 * D:3 * D], w1t[3 * D:4 * D])
    w1x = jnp.concatenate([a, c], axis=1).astype(jnp.bfloat16)    # [D, 4D]
    w1n = jnp.concatenate([bb, dd], axis=1).astype(jnp.bfloat16)  # [D, 4D]
    w2b = w2.astype(jnp.bfloat16)                                 # [D, 2D]

    # Consolidated bias blocks (avoid several near-empty VMEM tiles/DMAs).
    brow = jnp.zeros((2, 4 * D), jnp.float32)
    brow = brow.at[0, :2 * D].set(b1)          # b1 folded into the U half
    brow = brow.at[1, 0].set(b3[0])            # b3 scalar
    bcol = jnp.stack([b2, w3[0]], axis=1)      # [D, 2]: col0=b2, col1=w3

    return dict(w1x=w1x, w1n=w1n, w2=w2b, brow=brow, bcol=bcol)


# ----------------------------- reference (pure JAX) ------------------------

def _reference(params, tf):
    """Literal translation of the PyTorch double loop (f32, HIGHEST precision)."""
    B, N, D = tf.shape
    w1x = params["w1x"].astype(jnp.float32)
    w1n = params["w1n"].astype(jnp.float32)
    a, c = w1x[:, :2 * D], w1x[:, 2 * D:]
    bb, dd = w1n[:, :2 * D], w1n[:, 2 * D:]
    b1 = params["brow"][0, :2 * D]
    b3 = params["brow"][1, 0]
    w2 = params["w2"].astype(jnp.float32)
    b2 = params["bcol"][:, 0]
    w3 = params["bcol"][:, 1]

    hp = jax.lax.Precision.HIGHEST
    tfn = jnp.roll(tf, -1, axis=1)
    mat = jnp.zeros((B, N, N), jnp.float32)
    for i in range(N):
        for j in range(i + 2, N):
            if j - i == N - 1:
                continue
            pre1 = (jnp.dot(tf[:, i], a, precision=hp)
                    + jnp.dot(tfn[:, i], bb, precision=hp)
                    + jnp.dot(tf[:, j], c, precision=hp)
                    + jnp.dot(tfn[:, j], dd, precision=hp) + b1)
            h1 = jax.nn.relu(pre1)
            h2 = jax.nn.relu(jnp.dot(h1, jnp.transpose(w2), precision=hp) + b2)
            s = jnp.tanh(jnp.dot(h2, w3, precision=hp) + b3)
            mat = mat.at[:, i, j].set(s)
    return mat


# ----------------------------- test driver --------------------------------

if __name__ == "__main__":
    key = jax.random.PRNGKey(0)
    B, N, D = 2, 8, 32      # batch, tour length, hidden_dim

    pkey, xkey, ckey = jax.random.split(key, 3)
    params = init_params(pkey, D)
    tour_features = jax.random.normal(xkey, (B, N, D), jnp.float32)
    coords = jax.random.uniform(ckey, (B, N, 2), jnp.float32)

    fwd = jax.jit(neural_search_forward)
    improved_tour, improvement_matrix = fwd(params, tour_features, coords)
    jax.block_until_ready(improvement_matrix)
    jax.block_until_ready(improved_tour)

    assert improved_tour.shape == (B, N)
    assert improvement_matrix.shape == (B, N, N)
    assert bool(jnp.all(improved_tour == jnp.arange(N, dtype=jnp.int32)[None, :]))

    ref = _reference(params, tour_features)
    max_err = float(jnp.max(jnp.abs(improvement_matrix - ref)))
    # Kernel feeds the MXU bf16 operands (f32 accumulate); reference is f32
    # HIGHEST precision with the same (bf16-stored) weights, hence the loose
    # tolerance.
    assert max_err < 2e-2, f"mismatch vs reference: {max_err}"

    print("KERNEL_OK")
</pallas_src>

<mosaic_0001>
module attributes {stable_mosaic.version = 11 : i64} {
  func.func @_neural_search_kernel(%arg0: i32, %arg1: memref<1x8x32xf32, #tpu.memory_space<vmem>>, %arg2: memref<32x128xbf16, #tpu.memory_space<vmem>>, %arg3: memref<32x128xbf16, #tpu.memory_space<vmem>>, %arg4: memref<32x64xbf16, #tpu.memory_space<vmem>>, %arg5: memref<2x128xf32, #tpu.memory_space<vmem>>, %arg6: memref<32x2xf32, #tpu.memory_space<vmem>>, %arg7: memref<1x64xf32, #tpu.memory_space<vmem>>, %arg8: memref<1x1x64xf32, #tpu.memory_space<vmem>>) attributes {dimension_semantics = [#tpu.dimension_semantics<parallel>], iteration_bounds = array<i64: 2>, scalar_prefetch = 0 : i64, scratch_operands = 0 : i64, tpu.core_type = #tpu.core_type<tc>, window_params = [{transform_indices = @transform_0, window_bounds = array<i64: 1, 8, 32>}, {pipeline_mode = #tpu.pipeline_mode<synchronous>, transform_indices = @transform_1, window_bounds = array<i64: 32, 128>}, {pipeline_mode = #tpu.pipeline_mode<synchronous>, transform_indices = @transform_2, window_bounds = array<i64: 32, 128>}, {pipeline_mode = #tpu.pipeline_mode<synchronous>, transform_indices = @transform_3, window_bounds = array<i64: 32, 64>}, {pipeline_mode = #tpu.pipeline_mode<synchronous>, transform_indices = @transform_4, window_bounds = array<i64: 2, 128>}, {pipeline_mode = #tpu.pipeline_mode<synchronous>, transform_indices = @transform_5, window_bounds = array<i64: 32, 2>}, {pipeline_mode = #tpu.pipeline_mode<synchronous>, transform_indices = @transform_6, window_bounds = array<i64: 1, 64>}, {transform_indices = @transform_7, window_bounds = array<i64: 1, 1, 64>}]} {
    %c0 = arith.constant 0 : index
    %c0_0 = arith.constant 0 : index
    %c0_1 = arith.constant 0 : index
    %0 = vector.load %arg1[%c0, %c0_0, %c0_1] : memref<1x8x32xf32, #tpu.memory_space<vmem>>, vector<1x8x32xf32>
    %1 = vector.extract_strided_slice %0 {offsets = [0, 1, 0], sizes = [1, 7, 32], strides = [1, 1, 1]} : vector<1x8x32xf32> to vector<1x7x32xf32>
    %2 = vector.extract_strided_slice %0 {offsets = [0, 0, 0], sizes = [1, 1, 32], strides = [1, 1, 1]} : vector<1x8x32xf32> to vector<1x1x32xf32>
    %3 = tpu.concatenate %1, %2 in 1 : vector<1x7x32xf32>, vector<1x1x32xf32> -> vector<1x8x32xf32>
    %4 = vector.shape_cast %0 : vector<1x8x32xf32> to vector<8x32xf32>
    %5 = arith.truncf %4 : vector<8x32xf32> to vector<8x32xbf16>
    %6 = vector.shape_cast %3 : vector<1x8x32xf32> to vector<8x32xf32>
    %7 = arith.truncf %6 : vector<8x32xf32> to vector<8x32xbf16>
    %c0_2 = arith.constant 0 : index
    %c0_3 = arith.constant 0 : index
    %8 = vector.load %arg2[%c0_2, %c0_3] : memref<32x128xbf16, #tpu.memory_space<vmem>>, vector<32x128xbf16>
    %cst = arith.constant dense<0.000000e+00> : vector<8x128xf32>
    %9 = tpu.matmul %5, %8, %cst {dimension_numbers = #tpu.dot_dimension_numbers<[1], [0], [0], [1], [0, 0, 1, 1], [], []>} : vector<8x32xbf16>, vector<32x128xbf16>, vector<8x128xf32> -> vector<8x128xf32>
    %c0_4 = arith.constant 0 : index
    %c0_5 = arith.constant 0 : index
    %10 = vector.load %arg3[%c0_4, %c0_5] : memref<32x128xbf16, #tpu.memory_space<vmem>>, vector<32x128xbf16>
    %cst_6 = arith.constant dense<0.000000e+00> : vector<8x128xf32>
    %11 = tpu.matmul %7, %10, %cst_6 {dimension_numbers = #tpu.dot_dimension_numbers<[1], [0], [0], [1], [0, 0, 1, 1], [], []>} : vector<8x32xbf16>, vector<32x128xbf16>, vector<8x128xf32> -> vector<8x128xf32>
    %12 = arith.addf %9, %11 : vector<8x128xf32>
    %c0_7 = arith.constant 0 : index
    %c0_8 = arith.constant 0 : index
    %13 = vector.load %arg5[%c0_7, %c0_8] : memref<2x128xf32, #tpu.memory_space<vmem>>, vector<1x128xf32>
    %14 = vector.broadcast %13 : vector<1x128xf32> to vector<8x128xf32>
    %15 = arith.addf %12, %14 : vector<8x128xf32>
    %16 = vector.extract_strided_slice %15 {offsets = [0, 0], sizes = [8, 64], strides = [1, 1]} : vector<8x128xf32> to vector<8x64xf32>
    %17 = vector.shape_cast %16 : vector<8x64xf32> to vector<1x8x64xf32>
    %18 = vector.extract_strided_slice %15 {offsets = [0, 64], sizes = [8, 64], strides = [1, 1]} : vector<8x128xf32> to vector<8x64xf32>
    %19 = vector.shape_cast %18 : vector<8x64xf32> to vector<1x8x64xf32>
    %20 = vector.shape_cast %17 : vector<1x8x64xf32> to vector<1x8x1x64xf32>
    %21 = vector.shape_cast %19 : vector<1x8x64xf32> to vector<1x1x8x64xf32>
    %22 = vector.broadcast %20 : vector<1x8x1x64xf32> to vector<1x8x8x64xf32>
    %23 = vector.broadcast %21 : vector<1x1x8x64xf32> to vector<1x8x8x64xf32>
    %24 = arith.addf %22, %23 : vector<1x8x8x64xf32>
    %cst_9 = arith.constant 0.000000e+00 : f32
    %25 = vector.broadcast %cst_9 : f32 to vector<1x8x8x64xf32>
    %26 = arith.maximumf %24, %25 : vector<1x8x8x64xf32>
    %27 = vector.shape_cast %26 : vector<1x8x8x64xf32> to vector<64x64xf32>
    %28 = tpu.transpose %27, [1, 0] : vector<64x64xf32> -> vector<64x64xf32>
    %29 = arith.truncf %28 : vector<64x64xf32> to vector<64x64xbf16>
    %c0_10 = arith.constant 0 : index
    %c0_11 = arith.constant 0 : index
    %30 = vector.load %arg6[%c0_10, %c0_11] : memref<32x2xf32, #tpu.memory_space<vmem>>, vector<32x1xf32>
    %c0_12 = arith.constant 0 : index
    %c1 = arith.constant 1 : index
    %31 = vector.load %arg6[%c0_12, %c1] : memref<32x2xf32, #tpu.memory_space<vmem>>, vector<32x1xf32>
    %c0_13 = arith.constant 0 : index
    %c0_14 = arith.constant 0 : index
    %32 = vector.load %arg4[%c0_13, %c0_14] : memref<32x64xbf16, #tpu.memory_space<vmem>>, vector<32x64xbf16>
    %cst_15 = arith.constant dense<0.000000e+00> : vector<32x64xf32>
    %33 = tpu.matmul %32, %29, %cst_15 {dimension_numbers = #tpu.dot_dimension_numbers<[1], [0], [0], [1], [0, 0, 1, 1], [], []>} : vector<32x64xbf16>, vector<64x64xbf16>, vector<32x64xf32> -> vector<32x64xf32>
    %34 = vector.broadcast %30 : vector<32x1xf32> to vector<32x64xf32>
    %35 = arith.addf %33, %34 : vector<32x64xf32>
    %cst_16 = arith.constant 0.000000e+00 : f32
    %36 = vector.broadcast %cst_16 : f32 to vector<32x64xf32>
    %37 = arith.maximumf %35, %36 : vector<32x64xf32>
    %c1_17 = arith.constant 1 : index
    %c0_18 = arith.constant 0 : index
    %38 = vector.load %arg5[%c1_17, %c0_18] : memref<2x128xf32, #tpu.memory_space<vmem>>, vector<1x1xf32>
    %39 = vector.broadcast %31 : vector<32x1xf32> to vector<32x64xf32>
    %40 = arith.mulf %37, %39 : vector<32x64xf32>
    %cst_19 = arith.constant dense<0.000000e+00> : vector<64xf32>
    %41 = vector.multi_reduction <add>, %40, %cst_19 [0] : vector<32x64xf32> to vector<64xf32>
    %42 = vector.shape_cast %41 : vector<64xf32> to vector<1x64xf32>
    %43 = vector.broadcast %38 : vector<1x1xf32> to vector<1x64xf32>
    %44 = arith.addf %42, %43 : vector<1x64xf32>
    %45 = math.tanh %44 : vector<1x64xf32>
    %c0_20 = arith.constant 0 : index
    %c0_21 = arith.constant 0 : index
    %46 = vector.load %arg7[%c0_20, %c0_21] : memref<1x64xf32, #tpu.memory_space<vmem>>, vector<1x64xf32>
    %47 = arith.mulf %45, %46 : vector<1x64xf32>
    %c0_22 = arith.constant 0 : index
    %c0_23 = arith.constant 0 : index
    %c0_24 = arith.constant 0 : index
    %48 = vector.load %arg8[%c0_22, %c0_23, %c0_24] : memref<1x1x64xf32, #tpu.memory_space<vmem>>, vector<1x1x64xf32>
    %49 = vector.shape_cast %48 : vector<1x1x64xf32> to vector<1x64xf32>
    %50 = vector.shape_cast %47 : vector<1x64xf32> to vector<1x1x64xf32>
    tpu.vector_store %arg8[%c0_22, %c0_23, %c0_24], %50 {strides = array<i32>} : memref<1x1x64xf32, #tpu.memory_space<vmem>>, vector<1x1x64xf32>,
    return
  }
  func.func @transform_0(%arg0: i32) -> (i32, i32, i32) {
    %c0_i32 = arith.constant 0 : i32
    %c0_i32_0 = arith.constant 0 : i32
    %c0_i32_1 = arith.constant 0 : i32
    return %arg0, %c0_i32, %c0_i32_0 : i32, i32, i32
  }
  func.func @transform_1(%arg0: i32) -> (i32, i32) {
    %c0_i32 = arith.constant 0 : i32
    %c0_i32_0 = arith.constant 0 : i32
    %c0_i32_1 = arith.constant 0 : i32
    return %c0_i32, %c0_i32_0 : i32, i32
  }
  func.func @transform_2(%arg0: i32) -> (i32, i32) {
    %c0_i32 = arith.constant 0 : i32
    %c0_i32_0 = arith.constant 0 : i32
    %c0_i32_1 = arith.constant 0 : i32
    return %c0_i32, %c0_i32_0 : i32, i32
  }
  func.func @transform_3(%arg0: i32) -> (i32, i32) {
    %c0_i32 = arith.constant 0 : i32
    %c0_i32_0 = arith.constant 0 : i32
    %c0_i32_1 = arith.constant 0 : i32
    return %c0_i32, %c0_i32_0 : i32, i32
  }
  func.func @transform_4(%arg0: i32) -> (i32, i32) {
    %c0_i32 = arith.constant 0 : i32
    %c0_i32_0 = arith.constant 0 : i32
    %c0_i32_1 = arith.constant 0 : i32
    return %c0_i32, %c0_i32_0 : i32, i32
  }
  func.func @transform_5(%arg0: i32) -> (i32, i32) {
    %c0_i32 = arith.constant 0 : i32
    %c0_i32_0 = arith.constant 0 : i32
    %c0_i32_1 = arith.constant 0 : i32
    return %c0_i32, %c0_i32_0 : i32, i32
  }
  func.func @transform_6(%arg0: i32) -> (i32, i32) {
    %c0_i32 = arith.constant 0 : i32
    %c0_i32_0 = arith.constant 0 : i32
    %c0_i32_1 = arith.constant 0 : i32
    return %c0_i32, %c0_i32_0 : i32, i32
  }
  func.func @transform_7(%arg0: i32) -> (i32, i32, i32) {
    %c0_i32 = arith.constant 0 : i32
    %c0_i32_0 = arith.constant 0 : i32
    %c0_i32_1 = arith.constant 0 : i32
    return %arg0, %c0_i32, %c0_i32_0 : i32, i32, i32
  }
}

</mosaic_0001>

<bundles_post_ra>
// kernel: neural_search_forward.1
= control target key start
LH: loop header
LB: loop body
LE: loop exit
PB: predicated region body
PF: predicated region fallthrough
CT: control target
= control target key end

     0   :  { %12 = vsyncpa [#allocation3], 0  ;;  %s1159_s0 = inlined_call_operand.vmem [shape: f32[2,8,32], index: 0, kind: input, shape index: {}]   ;;  %s1160_s1 = inlined_call_operand.vmem [shape: bf16[32,128], index: 1, kind: input, shape index: {}]   ;;  %s1161_s2 = inlined_call_operand.hbm [shape: bf16[32,128], index: 2, kind: input, shape index: {}]   ;;  %s1162_s3 = inlined_call_operand.hbm [shape: bf16[32,64], index: 3, kind: input, shape index: {}]   ;;  %s1163_s4 = inlined_call_operand.vmem [shape: f32[2,128], index: 4, kind: input, shape index: {}]   ;;  %s1164_s5 = inlined_call_operand.vmem [shape: f32[32,2], index: 5, kind: input, shape index: {}]   ;;  %s1165_s6 = inlined_call_operand.vmem [shape: f32[1,64], index: 6, kind: input, shape index: {}]   ;;  %s1166_s7 = inlined_call_operand.vmem [shape: f32[2,1,64], index: 7, kind: output, shape index: {}]  }
   0x1   :  { %13 = vsyncpa [#allocation5], 0  ;;  %s1027_s24 = smov 0  }
   0x2 LB: > { %s1033_s25 = sadd.s32 4294967295, %s975_s24   ;;  %p795_p0 = scmp.ge.s32.totalorder %s975_s24, 1  ;;  %s975_s24 = sphi %s1027_s24, %s19_s24  }
   0x3   : > { %p202_p1 = scmp.lt.s32.totalorder %s975_s24, 3  ;;  %s977_s26 = smov [#allocation2]  }
   0x4   : > { %s217_s27 = sshll.u32 %s977_s26, 4  ;;  %p1167_p3 = scmp.eq.s32.totalorder %s1033_s25, 0  ;;  %s218_s27 = int_to_ptr.vmem [resolvable:$true] %s217_s27 }
   0x5   : > { %p1037_p2 = pnand %p795_p0, %p202_p1  ;;  %s978_s29 = smov [#allocation4]  }
   0x6   : > { %s230_s30 = sshll.u32 %s978_s29, 4  ;;  %s905_s11 = scalar_lea.hbm %s1161_s2, 256  ;;  %s1050_s30 = int_to_ptr.vmem [resolvable:$true] %s230_s30 }
   0x7   : > { %s1169_s28 = scalar_select %p1037_p2, 1, 0 }
   0x8   : > { %p864_p4 = pneg %p1037_p2  ;;  %p906_p6 = scmp.ne.s32.totalorder %s1161_s2, %s905_s11 }
   0x9   : > { %p912_p10 = scmp.lt.u32.totalorder %s905_s11, %s1161_s2 }
   0xa   : > { %p1046_p5 = pnand %p1167_p3, %p864_p4 }
   0xc   : > { %p907_p7 = pneg %p1046_p5 }
   0xe   : > { %p908_p8 = pnand %p907_p7, %p906_p6 }
  0x10   : > { %p909_p9 = pneg %p908_p8 }
  0x12   : > { %p914_p11 = pnand %p912_p10, %p909_p9 }
  0x14   : > { %917 = shalt.err (!%p914_p11)
}
  0x15   : > { %s918_s16 = scalar_lea.vmem %s218_s27, 256  ;;  %p926_p1 = scmp.lt.s32.totalorder %s218_s27, %s218_s27 }
  0x16   : > { %p919_p12 = scmp.ne.s32.totalorder %s218_s27, %s918_s16  ;;  %p927_p4 = scmp.lt.s32.totalorder %s918_s16, %s918_s16 }
  0x18   : > { %p921_p13 = pnand %p919_p12, %p907_p7  ;;  %p928_p3 = por %p927_p4, %p926_p1 }
  0x1a   : > { %p922_p0 = pneg %p921_p13 }
  0x1c   : > { %p929_p2 = pnand %p928_p3, %p922_p0 }
  0x1e   : > { %932 = shalt.err (!%p929_p2)
}
  0x1f   : > { %s979_s17 = smov 64   ;;  %s980_s18 = smov 4  }
  0x20   : > { %867 = dma.hbm_to_vmem [thread:$0]  (!%p1046_p5), %s1161_s2, 256, %s218_s27, [#allocation3], %s979_s17, %s979_s17, %s980_s18  }
  0x21   : > { %s933_s23 = scalar_lea.hbm %s1162_s3, 256 }
  0x22   : > { %p934_p6 = scmp.ne.s32.totalorder %s1162_s3, %s933_s23  ;;  %p940_p8 = scmp.lt.u32.totalorder %s933_s23, %s1162_s3 }
  0x24   : > { %p936_p2 = pnand %p934_p6, %p907_p7 }
  0x26   : > { %p937_p3 = pneg %p936_p2 }
  0x28   : > { %p942_p9 = pnand %p940_p8, %p937_p3 }
  0x2a   : > { %945 = shalt.err (!%p942_p9)
}
  0x2b   : > { %s946_s27 = scalar_lea.vmem %s1050_s30, 256  ;;  %p954_p13 = scmp.lt.s32.totalorder %s1050_s30, %s1050_s30 }
  0x2c   : > { %p947_p10 = scmp.ne.s32.totalorder %s1050_s30, %s946_s27  ;;  %p955_p0 = scmp.lt.s32.totalorder %s946_s27, %s946_s27 }
  0x2e   : > { %p949_p11 = pnand %p947_p10, %p907_p7  ;;  %p956_p1 = por %p955_p0, %p954_p13 }
  0x30   : > { %p950_p12 = pneg %p949_p11 }
  0x32   : > { %p957_p4 = pnand %p956_p1, %p950_p12 }
  0x34   : > { %960 = shalt.err (!%p957_p4)
}
  0x35   : > { %870 = dma.hbm_to_vmem [thread:$0]  (!%p1046_p5), %s1162_s3, 256, %s1050_s30, [#allocation5], %s979_s17, %s979_s17, %s980_s18  }
  0x36   : > { %p1171_p6 = scmp.ne.s32.totalorder %s1169_s28, 0 }
  0x37   : > { %p1172_p2 = scmp.eq.s32.totalorder (!%p1171_p6), %s1033_s25, 0 }
  0x38   : > { %262 = sbr.rel (%p1171_p6) target bundleno = 839 (0x347), region = 48 }
  0x3f   : > { %966 = dma.done.wait (%p1172_p2), [#allocation3], 256   ;;  %p1173_p7 = pmov %p1172_p2 }
  0x40   : > { %p1174_p3 = pmov %p1172_p2 }
  0x41   : > { %968 = vsyncadd (%p1173_p7), [#allocation3], 4294967040 }
  0x42   : > { %970 = dma.done.wait (%p1174_p3), [#allocation5], 256   ;;  %p1175_p8 = pmov %p1172_p2 }
  0x43   : > { %p295_p9 = scmp.lt.s32.totalorder %s1033_s25, 1  ;;  %v981_v0 = vmov 0.0   ;;  %vm982_vm0 = vmmov 0   ;;  %v897_v1 = vld [vmem:[#allocation2] sm:$0xff]   ;;  %v898_v2 = vld [vmem:[#allocation2 + $0x8] sm:$0xff]   ;;  %vm331_vm1 = vcmask 261120   ;;  %v441_v22 = vlaneseq }
  0x44   : > { %972 = vsyncadd (%p1175_p8), [#allocation5], 4294967040  ;;  %828 = vmatprep.subr.bf16.mxu1 %v981_v0  ;;  %832 = vmatprep.mubr.msk.bf16.mxu1 %vm982_vm0, %v981_v0  ;;  %v899_v6 = vld [vmem:[%s1160_s1] sm:$0xff]   ;;  %v900_v7 = vld [vmem:[%s1160_s1 + $0x8] sm:$0xff]   ;;  %s983_s20 = smov 64   ;;  %vm619_vm2 = vcmask 523264  }
  0x45   : > { %s1177_s25 = smov (!%p295_p9, %s1033_s25), 1  ;;  %829 = vmatpush3.bf16.msra.mxu1 %v897_v1  ;;  %v809_v14 = vld [vmem:[%s1163_s4] ss:$0 sm:$0xff]  ;;  %v984_v20 = vmov 1966171168   ;;  %v442_v24 = vshrl.u32 %v441_v22, 7 }
  0x46   : > { %s802_s28 = sshll.u32 %s1177_s25, 3  ;;  %830 = vmatprep.subr.bf16.mxu1 %v981_v0  ;;  %v439_v21 = vunpack.c.l.s4 %v984_v20  ;;  %v901_v1 = vld [vmem:[#allocation4] sm:$0xff]   ;;  %s301_s14 = scalar_lea.vmem %s1166_s7, %s1177_s25  ;;  %vm722_vm3 = vcmask 516096  }
  0x47   : > { %s298_s13 = scalar_lea.vmem %s1159_s0, %s802_s28  ;;  %v488_v28 = vsub.s32 0, %v442_v24  ;;  %852 = vmatprep.mubr.msk.bf16.mxu0 %vm619_vm2, %v901_v1 }
  0x48   : > { %v303_v3 = vld [vmem:[%s298_s13] sm:$0xff]  ;;  %v440_v23 = vunpack.c.0.s8 %v439_v21  ;;  %v902_v21 = vld [vmem:[#allocation4 + $0x8] sm:$0xff]  }
  0x49   : > { %v305_v4 = vrot.slane %v303_v3, 1  ;;  %831 = vmatpush3.bf16.msra.mxu1 %v898_v2  ;;  %v309_v8 = vpack.c.bf16 %v303_v3, %v303_v3  ;;  %v581_v2 = vld [vmem:[%s1164_s5] sm:$0xff]  ;;  %v985_v3 = vmov 0  }
  0x4a   : > { %836 = vmatprep.subr.bf16.mxu1 %v981_v0  ;;  %v443_v25 = vsub.s32 %v440_v23, %v442_v24  ;;  %893 = vset.pattern.permute.xlu1 %v985_v3 }
  0x4b   : > { %v310_v5 = vpack.c.bf16 %v305_v4, %v305_v4  ;;  %591 = vperm.xlu1 %893, %v581_v2   ;;  %v582_v4 = vld [vmem:[%s1164_s5 + $0x8] sm:$0xff] }
  0x4d   : > { %833 = vmatmul.mubr.msk.bf16.vlgmr.msra.gmra.mrb[0].mxu1 %vm331_vm1, %v310_v5  ;;  %v583_v5 = vld [vmem:[%s1164_s5 + $0x10] sm:$0xff] }
  0x4e   : > { %837 = vmatpush3.bf16.msra.mxu1 %v899_v6  ;;  %840 = vmatprep.mubr.msk.bf16.mxu1 %vm982_vm0, %v981_v0  ;;  %v584_v6 = vld [vmem:[%s1164_s5 + $0x18] sm:$0xff] }
  0x4f   : > { %838 = vmatprep.subr.bf16.mxu1 %v981_v0  ;;  %596 = vperm.xlu1 %893, %v582_v4  }
  0x52   : > { %839 = vmatpush3.bf16.msra.mxu1 %v900_v7  ;;  %v986_v7 = vmov 1  }
  0x53   : > { %601 = vperm.xlu1 %893, %v583_v5  }
  0x55   : > { %841 = vmatmul.mubr.msk.bf16.vlgmr.msra.gmra.mrb[4].mxu1 %vm331_vm1, %v309_v8  ;;  %v679_v8 = vld [vmem:[%s1163_s4 + $0x1] sm:$0x1] }
  0x57   : > { %606 = vperm.xlu1 %893, %v584_v6  }
  0x5b   : > { %894 = vset.pattern.permute.xlu1 %v986_v7 }
  0x5c   : > { %681 = vperm.xlu1 %894, %v581_v2  }
  0x60   : > { %685 = vperm.xlu1 %894, %v582_v4  }
  0x64   : > { %689 = vperm.xlu1 %894, %v583_v5  }
  0x68   : > { %693 = vperm.xlu1 %894, %v584_v6  }
  0x6c   : > { %895 = vset.pattern.permute.xlu1 %v985_v3 }
  0x6d   : > { %715 = vperm.xlu1 %895, %v679_v8  }
  0xca   : > { %v592_v22 = vpop.permute.xlu1 %591 }
  0xce   : > { %v597_v23 = vpop.permute.xlu1 %596 }
  0xd2   : > { %v602_v24 = vpop.permute.xlu1 %601 }
 0x120   : > { %v369_v9 = vpop.f32.mrb[0].mxu1 }
 0x121   : > { %v834_v10 = vpop.f32.mrb[1].mxu1 }
 0x122   : > { %v372_v11 = vpop.f32.mrb[2].mxu1 }
 0x123   : > { %v835_v12 = vpop.f32.mrb[3].mxu1 }
 0x128   : > { %v424_v13 = vpop.f32.mrb[4].mxu1 }
 0x129   : > { %v425_v15 = vadd.f32 %v424_v13, %v369_v9  ;;  %v842_v16 = vpop.f32.mrb[5].mxu1 }
 0x12a   : > { %v427_v17 = vpop.f32.mrb[6].mxu1 }
 0x12b   : > { %v435_v18 = vadd.f32 %v809_v14, %v425_v15  ;;  %v843_v19 = vpop.f32.mrb[7].mxu1 }
 0x12d   : > { %526 = vrot.lane.b32.xlu0 %v435_v18, %s983_s20  ;;  %v444_v26 = vrot.slane %v435_v18, %v443_v25  ;;  %v437_v33 = vcombine.high %v435_v18, %v435_v18 }
 0x12f   : > { %v452_v27 = vcombine.high %v444_v26, %v444_v26  ;;  %v460_v29 = vrot.slane %v444_v26, %v443_v25  ;;  %v451_v39 = vrot.slane %v437_v33, %v443_v25 }
 0x131   : > { %v474_v30 = vrot.slane %v452_v27, %v443_v25  ;;  %v489_v31 = vrot.slane %v460_v29, %v488_v28  ;;  %v482_v35 = vcombine.high %v460_v29, %v460_v29  ;;  %v467_v45 = vrot.slane %v451_v39, %v443_v25 }
 0x132   : > { %v453_v46 = vcombine.high %v451_v39, %v451_v39 }
 0x133   : > { %v493_v36 = vrot.slane %v474_v30, %v488_v28  ;;  %v497_v40 = vrot.slane %v482_v35, %v488_v28  ;;  %v484_v41 = vcombine.high %v474_v30, %v474_v30  ;;  %v505_v49 = vrot.slane %v467_v45, %v488_v28 }
 0x134   : > { %v481_v50 = vrot.slane %v453_v46, %v443_v25  ;;  %v483_v54 = vcombine.high %v467_v45, %v467_v45  ;;  %v607_v25 = vpop.permute.xlu1 %606 }
 0x135   : > { %v501_v44 = vrot.slane %v484_v41, %v488_v28 }
 0x136   : > { %v509_v53 = vrot.slane %v481_v50, %v488_v28  ;;  %v513_v57 = vrot.slane %v483_v54, %v488_v28  ;;  %v485_v58 = vcombine.high %v481_v50, %v481_v50 }
 0x138   : > { %v517_v61 = vrot.slane %v485_v58, %v488_v28  ;;  %v682_v26 = vpop.permute.xlu1 %681 }
 0x13c   : > { %v686_v27 = vpop.permute.xlu1 %685 }
 0x140   : > { %v690_v33 = vpop.permute.xlu1 %689 }
 0x19f   : > { %v527_v32 = vpop.permute.xlu0 %526 }
 0x1a0   : > { %v529_v34 = vadd.f32 %v527_v32, %v489_v31  ;;  %v530_v38 = vadd.f32 %v527_v32, %v493_v36  ;;  %v531_v43 = vadd.f32 %v527_v32, %v497_v40  ;;  %v532_v48 = vadd.f32 %v527_v32, %v501_v44  ;;  %v694_v44 = vpop.permute.xlu1 %693 }
 0x1a1   : > { %v533_v52 = vadd.f32 %v527_v32, %v505_v49  ;;  %v534_v56 = vadd.f32 %v527_v32, %v509_v53  ;;  %v535_v60 = vadd.f32 %v527_v32, %v513_v57  ;;  %v536_v63 = vadd.f32 %v527_v32, %v517_v61  ;;  %v720_v61 = vld [vmem:[%s1165_s6] sm:$0x1] }
 0x1a2   : > { %v537_v37 = vmax.f32 %v529_v34, 0.0  ;;  %v538_v42 = vmax.f32 %v530_v38, 0.0  ;;  %v539_v47 = vmax.f32 %v531_v43, 0.0  ;;  %v540_v51 = vmax.f32 %v532_v48, 0.0 }
 0x1a3   : > { %v541_v55 = vmax.f32 %v533_v52, 0.0  ;;  %v542_v59 = vmax.f32 %v534_v56, 0.0  ;;  %v543_v62 = vmax.f32 %v535_v60, 0.0  ;;  %v544_v0 = vmax.f32 %v536_v63, 0.0 }
 0x1a4   : > { %545 = vxpose.xlu0.b32.start [1/8] (short) (narrow) %v537_v37, 64  ;;  %v716_v58 = vpop.permute.xlu1 %715 }
 0x1a8   : > { %546 = vxpose.xlu0.b32.cont [2/8] (short) (narrow) %v538_v42, 64 }
 0x1ac   : > { %547 = vxpose.xlu0.b32.cont [3/8] (short) (narrow) %v539_v47, 64 }
 0x1b0   : > { %548 = vxpose.xlu0.b32.cont [4/8] (short) (narrow) %v540_v51, 64 }
 0x1b4   : > { %549 = vxpose.xlu0.b32.cont [5/8] (short) (narrow) %v541_v55, 64 }
 0x1b8   : > { %550 = vxpose.xlu0.b32.cont [6/8] (short) (narrow) %v542_v59, 64 }
 0x1bc   : > { %551 = vxpose.xlu0.b32.cont [7/8] (short) (narrow) %v543_v62, 64 }
 0x1c0   : > { %552 = vxpose.xlu0.b32.end [8/8] (short) (narrow) %v544_v0, 64 }
 0x1e9   : > { %896 = vset.pattern.permute.xlu0 %v985_v3 }
 0x224   : > { %v561_v9 = vpop.trf.xlu0 }
 0x228   : > { %v562_v10 = vpop.trf.xlu0 }
 0x229   : > { %v577_v11 = vpack.c.bf16 %v562_v10, %v561_v9 }
 0x22b   : > { %844 = vmatprep.subr.bf16.mxu0 %v577_v11 }
 0x22c   : > { %845 = vmatpush3.bf16.msra.mxu0 %v577_v11  ;;  %v563_v12 = vpop.trf.xlu0 }
 0x230   : > { %v564_v13 = vpop.trf.xlu0 }
 0x231   : > { %v578_v14 = vpack.c.bf16 %v564_v13, %v563_v12 }
 0x233   : > { %846 = vmatprep.subr.bf16.mxu0 %v578_v14 }
 0x234   : > { %847 = vmatpush3.bf16.msra.mxu0 %v578_v14  ;;  %v565_v15 = vpop.trf.xlu0 }
 0x238   : > { %v566_v16 = vpop.trf.xlu0 }
 0x239   : > { %v579_v17 = vpack.c.bf16 %v566_v16, %v565_v15 }
 0x23b   : > { %848 = vmatprep.subr.bf16.mxu0 %v579_v17 }
 0x23c   : > { %849 = vmatpush3.bf16.msra.mxu0 %v579_v17  ;;  %v567_v18 = vpop.trf.xlu0 }
 0x240   : > { %v568_v19 = vpop.trf.xlu0 }
 0x241   : > { %v580_v20 = vpack.c.bf16 %v568_v19, %v567_v18 }
 0x243   : > { %850 = vmatprep.subr.bf16.mxu0 %v580_v20 }
 0x244   : > { %851 = vmatpush3.bf16.msra.mxu0 %v580_v20 }
 0x247   : > { %853 = vmatmul.mubr.msk.bf16.vlgmr.msra.gmra.mrb[0].mxu0 %vm619_vm2, %v902_v21 }
 0x31a   : > { %v854_v28 = vpop.f32.mrb[0].mxu0 }
 0x31b   : > { %v669_v29 = vadd.f32 %v854_v28, %v602_v24  ;;  %v660_v30 = vpop.f32.mrb[1].mxu0 }
 0x31c   : > { %v661_v31 = vadd.f32 %v660_v30, %v592_v22  ;;  %v855_v32 = vpop.f32.mrb[2].mxu0 }
 0x31d   : > { %v672_v34 = vadd.f32 %v855_v32, %v607_v25  ;;  %v663_v35 = vpop.f32.mrb[3].mxu0  ;;  %v677_v36 = vmax.f32 %v669_v29, 0.0 }
 0x31e   : > { %v675_v37 = vmax.f32 %v661_v31, 0.0  ;;  %v664_v38 = vadd.f32 %v663_v35, %v597_v23 }
 0x31f   : > { %v678_v40 = vmax.f32 %v672_v34, 0.0  ;;  %v698_v42 = vmul.f32 %v690_v33, %v677_v36 }
 0x320   : > { %v696_v39 = vmul.f32 %v682_v26, %v675_v37  ;;  %v676_v41 = vmax.f32 %v664_v38, 0.0 }
 0x321   : > { %v699_v46 = vmul.f32 %v694_v44, %v678_v40  ;;  %v703_v49 = vsel %vm619_vm2, %v698_v42, 0.0 }
 0x322   : > { %v697_v43 = vmul.f32 %v686_v27, %v676_v41  ;;  %v700_v45 = vsel %vm619_vm2, %v696_v39, 0.0 }
 0x323   : > { %v705_v51 = vsel %vm619_vm2, %v699_v46, 0.0 }
 0x324   : > { %v701_v47 = vsel %vm619_vm2, %v697_v43, 0.0 }
 0x325   : > { %v702_v48 = vadd.f32 %v701_v47, %v700_v45 }
 0x327   : > { %v704_v50 = vadd.f32 %v703_v49, %v702_v48 }
 0x329   : > { %v706_v52 = vadd.f32 %v705_v51, %v704_v50 }
 0x32b   : > { %v707_v53 = vrot.slane %v706_v52, 4 }
 0x32d   : > { %v708_v54 = vadd.f32 %v707_v53, %v706_v52 }
 0x32f   : > { %v709_v55 = vrot.slane %v708_v54, 2 }
 0x331   : > { %v710_v56 = vadd.f32 %v709_v55, %v708_v54 }
 0x333   : > { %v711_v57 = vrot.slane %v710_v56, 1 }
 0x335   : > { %v712_v59 = vadd.f32 %v711_v57, %v710_v56 }
 0x337   : > { %v718_v60 = vadd.f32 %v716_v58, %v712_v59 }
 0x339   : > { %903 = vtanh.f32 %v718_v60 }
 0x343   : > { %v904_v62 = vpop.eup %903 }
 0x344   : > { %v721_v63 = vmul.f32 %v904_v62, %v720_v61 }
 0x346   : > { %723 = vst.msk [vmem:[%s301_s14] sm:$0x1] %vm722_vm3, %v721_v63 }
 0x347 PF: > { %s19_s24 = sadd.s32 1, %s975_s24  }
 0x348   : > { %p16_p5 = scmp.ge.s32.totalorder %s19_s24, 4  }
 0x34a   :  { %18 = sbr.rel (!%p16_p5) target bundleno = 2 (0x2), region = 87 }
 0x351   :  { %741 = vsyncpa [#allocation3], 1 }
 0x352   :  { %743 = vsyncpa [#allocation3 + $0x1], 1 }
 0x353   :  { %744 = vsyncpa [#allocation5], 1 }

</bundles_post_ra>
